<compile_context>
chip_gen: v5e
topology: v5e:2x2
jax: 0.10.0
libtpu: 0.0.40
codegen_flags: <defaults>
</compile_context>

<pallas_src>
import math

import jax
import jax.numpy as jnp
from jax.experimental import pallas as pl
from jax.experimental.pallas import tpu as pltpu


# ----------------------------- tiling helper -----------------------------

def _choose_hw_tile(HW, N, target=2048):
    """Lane-dense HW tile: either the full HW (always a legal last block dim) or a
    multiple of 128 <= target.  Tries to expose >= 2 grid steps for v7x megacore."""
    if HW <= 128:
        return HW
    if HW <= target:
        if N >= 2:
            return HW
        # N == 1: split HW so both v7x TensorCores get work (multiple of 128).
        half = (HW // 2 // 128) * 128
        return half if half >= 128 else HW
    return max((target // 128) * 128, 128)


# ----------------------------- Pallas kernel -----------------------------

def _class_head_kernel(x_ref, w_ref, b_ref, o_ref):
    # x_ref: (C, t_hw) f32 NCHW tile   w_ref: (Nout, C) bf16   b_ref: (Nout, 1) f32
    x = x_ref[...].astype(jnp.bfloat16)           # in-kernel cast, hidden under DMA
    acc = jnp.dot(w_ref[...], x, preferred_element_type=jnp.float32)
    o_ref[...] = acc + b_ref[...]                 # f32 bias epilogue, no activation


def class_head_conv1x1(x_nchw, w, b, *, hw_tile_target=2048):
    """1x1 conv over NCHW input.  w: (Nout, C) (PyTorch conv weight layout, squeezed),
    b: (Nout,).  Returns (N, Nout, H*W) float32 (channels-first, lane-dense)."""
    N, C, H, W = x_nchw.shape
    HW = H * W
    Nout = w.shape[0]

    x3 = x_nchw.reshape(N, C, HW)                 # free view of the NCHW layout
    t_hw = _choose_hw_tile(HW, N, hw_tile_target)
    grid = (N, pl.cdiv(HW, t_hw))

    cost = pl.CostEstimate(
        flops=2 * N * HW * C * Nout,
        transcendentals=0,
        bytes_accessed=N * C * HW * 4 + N * Nout * HW * 4 + C * Nout * 2,
    )

    out = pl.pallas_call(
        _class_head_kernel,
        out_shape=jax.ShapeDtypeStruct((N, Nout, HW), jnp.float32),
        grid_spec=pltpu.PrefetchScalarGridSpec(
            num_scalar_prefetch=0,
            grid=grid,
            in_specs=[
                # activations: NCHW tile, streamed; ragged final HW block handled by Pallas
                pl.BlockSpec((None, C, t_hw), lambda n, j: (n, 0, j)),
                # weights / bias: tiny, resident in VMEM
                pl.BlockSpec((Nout, C), lambda n, j: (0, 0)),
                pl.BlockSpec((Nout, 1), lambda n, j: (0, 0)),
            ],
            out_specs=pl.BlockSpec((None, Nout, t_hw), lambda n, j: (n, 0, j)),
        ),
        compiler_params=pltpu.CompilerParams(
            dimension_semantics=("parallel", "parallel"),   # megacore split on v7x
            vmem_limit_bytes=32 * 1024 * 1024,              # safe on v5e/v6e/v7x
        ),
        cost_estimate=cost,
    )(
        x3,                                      # f32 in HBM; cast to bf16 in-kernel
        w.astype(jnp.bfloat16),
        b.reshape(Nout, 1).astype(jnp.float32),
    )
    return out


# ----------------------------- ClassHead -----------------------------

def make_class_head_params(key, inchannels=512, num_anchors=2):
    """Deterministic Conv2d(inchannels, num_anchors*2, 1) params (PyTorch-style init).
    Weight stored as (Nout, C) — the squeezed PyTorch conv weight layout."""
    cout = num_anchors * 2
    kw, kb = jax.random.split(key)
    bound = 1.0 / math.sqrt(inchannels)
    w = jax.random.uniform(kw, (cout, inchannels), jnp.float32, -bound, bound)
    b = jax.random.uniform(kb, (cout,), jnp.float32, -bound, bound)
    return {"w": w, "b": b, "num_anchors": num_anchors}


def class_head_forward(params, x_nchw):
    """Matches ClassHead.forward: conv1x1 -> permute(0,2,3,1) -> view(N, -1, 2)."""
    N = x_nchw.shape[0]
    y = class_head_conv1x1(x_nchw, params["w"], params["b"])   # (N, Nout, HW)
    # Tiny output permute (Nout x HW, ~128x smaller than the activations), then the
    # zero-cost view to (N, H*W*num_anchors, 2).
    return jnp.transpose(y, (0, 2, 1)).reshape(N, -1, 2)


# ----------------------------- main -----------------------------

if __name__ == "__main__":
    key = jax.random.PRNGKey(0)
    pkey, xkey = jax.random.split(key)

    inchannels, num_anchors = 512, 2      # module defaults
    N, H, W = 2, 16, 16                   # small spatial size

    params = make_class_head_params(pkey, inchannels, num_anchors)
    x = jax.random.normal(xkey, (N, inchannels, H, W), jnp.float32)

    fwd = jax.jit(lambda xx: class_head_forward(params, xx))
    out = fwd(x)
    jax.block_until_ready(out)

    # shape check: (N, H*W*num_anchors, 2)
    assert out.shape == (N, H * W * num_anchors, 2), out.shape
    assert bool(jnp.all(jnp.isfinite(out)))

    # numerical check against a plain-JAX f32 reference (loose tol for bf16 MXU operands)
    x_nhwc = jnp.transpose(x, (0, 2, 3, 1)).reshape(N * H * W, inchannels)
    ref = (x_nhwc @ params["w"].T + params["b"]).reshape(N, -1, 2)
    assert bool(jnp.allclose(out, ref, atol=5e-2, rtol=5e-2))

    print("KERNEL_OK")
</pallas_src>

<mosaic_0001>
module attributes {stable_mosaic.version = 11 : i64} {
  func.func @_class_head_kernel(%arg0: i32, %arg1: i32, %arg2: memref<1x512x256xf32, #tpu.memory_space<vmem>>, %arg3: memref<4x512xbf16, #tpu.memory_space<vmem>>, %arg4: memref<4x1xf32, #tpu.memory_space<vmem>>, %arg5: memref<1x4x256xf32, #tpu.memory_space<vmem>>) attributes {dimension_semantics = [#tpu.dimension_semantics<parallel>, #tpu.dimension_semantics<parallel>], iteration_bounds = array<i64: 2, 1>, scalar_prefetch = 0 : i64, scratch_operands = 0 : i64, tpu.core_type = #tpu.core_type<tc>, window_params = [{transform_indices = @transform_0, window_bounds = array<i64: 1, 512, 256>}, {pipeline_mode = #tpu.pipeline_mode<synchronous>, transform_indices = @transform_1, window_bounds = array<i64: 4, 512>}, {pipeline_mode = #tpu.pipeline_mode<synchronous>, transform_indices = @transform_2, window_bounds = array<i64: 4, 1>}, {transform_indices = @transform_3, window_bounds = array<i64: 1, 4, 256>}]} {
    %c0 = arith.constant 0 : index
    %c0_0 = arith.constant 0 : index
    %c0_1 = arith.constant 0 : index
    %0 = vector.load %arg2[%c0, %c0_0, %c0_1] : memref<1x512x256xf32, #tpu.memory_space<vmem>>, vector<1x512x256xf32>
    %1 = vector.shape_cast %0 : vector<1x512x256xf32> to vector<512x256xf32>
    %2 = arith.truncf %1 : vector<512x256xf32> to vector<512x256xbf16>
    %c0_2 = arith.constant 0 : index
    %c0_3 = arith.constant 0 : index
    %3 = vector.load %arg3[%c0_2, %c0_3] : memref<4x512xbf16, #tpu.memory_space<vmem>>, vector<4x512xbf16>
    %cst = arith.constant dense<0.000000e+00> : vector<4x256xf32>
    %4 = tpu.matmul %3, %2, %cst {dimension_numbers = #tpu.dot_dimension_numbers<[1], [0], [0], [1], [0, 0, 1, 1], [], []>} : vector<4x512xbf16>, vector<512x256xbf16>, vector<4x256xf32> -> vector<4x256xf32>
    %c0_4 = arith.constant 0 : index
    %c0_5 = arith.constant 0 : index
    %5 = vector.load %arg4[%c0_4, %c0_5] : memref<4x1xf32, #tpu.memory_space<vmem>>, vector<4x1xf32>
    %6 = vector.broadcast %5 : vector<4x1xf32> to vector<4x256xf32>
    %7 = arith.addf %4, %6 : vector<4x256xf32>
    %c0_6 = arith.constant 0 : index
    %c0_7 = arith.constant 0 : index
    %c0_8 = arith.constant 0 : index
    %8 = vector.load %arg5[%c0_6, %c0_7, %c0_8] : memref<1x4x256xf32, #tpu.memory_space<vmem>>, vector<1x4x256xf32>
    %9 = vector.shape_cast %8 : vector<1x4x256xf32> to vector<4x256xf32>
    %10 = vector.shape_cast %7 : vector<4x256xf32> to vector<1x4x256xf32>
    tpu.vector_store %arg5[%c0_6, %c0_7, %c0_8], %10 {strides = array<i32>} : memref<1x4x256xf32, #tpu.memory_space<vmem>>, vector<1x4x256xf32>,
    return
  }
  func.func @transform_0(%arg0: i32, %arg1: i32) -> (i32, i32, i32) {
    %c0_i32 = arith.constant 0 : i32
    %c0_i32_0 = arith.constant 0 : i32
    return %arg0, %c0_i32, %arg1 : i32, i32, i32
  }
  func.func @transform_1(%arg0: i32, %arg1: i32) -> (i32, i32) {
    %c0_i32 = arith.constant 0 : i32
    %c0_i32_0 = arith.constant 0 : i32
    %c0_i32_1 = arith.constant 0 : i32
    return %c0_i32, %c0_i32_0 : i32, i32
  }
  func.func @transform_2(%arg0: i32, %arg1: i32) -> (i32, i32) {
    %c0_i32 = arith.constant 0 : i32
    %c0_i32_0 = arith.constant 0 : i32
    %c0_i32_1 = arith.constant 0 : i32
    return %c0_i32, %c0_i32_0 : i32, i32
  }
  func.func @transform_3(%arg0: i32, %arg1: i32) -> (i32, i32, i32) {
    %c0_i32 = arith.constant 0 : i32
    %c0_i32_0 = arith.constant 0 : i32
    return %arg0, %c0_i32, %arg1 : i32, i32, i32
  }
}

</mosaic_0001>

<bundles_post_ra>
// kernel: _lambda_.1
= control target key start
LH: loop header
LB: loop body
LE: loop exit
PB: predicated region body
PF: predicated region fallthrough
CT: control target
= control target key end

     0   :  { %s701_s12 = smov 0   ;;  %s703_s13 = smov 0   ;;  %s890_s0 = inlined_call_operand.vmem [shape: f32[2,512,256], index: 0, kind: input, shape index: {}]   ;;  %s891_s1 = inlined_call_operand.vmem [shape: bf16[4,512], index: 1, kind: input, shape index: {}]   ;;  %s892_s2 = inlined_call_operand.vmem [shape: f32[4,1], index: 2, kind: input, shape index: {}]   ;;  %s893_s3 = inlined_call_operand.vmem [shape: f32[2,4,256], index: 3, kind: output, shape index: {}]  }
   0x1   :  { %s705_s14 = smov 0  }
   0x2 LB: > { %s25_s15 = sadd.s32 1, %s674_s13  ;;  %p621_p0 = scmp.ge.s32.totalorder %s678_s14, 1  ;;  %s678_s14 = sphi %s705_s14, %s13_s14   ;;  %s674_s13 = sphi %s703_s13, %s895_s13   ;;  %s670_s12 = sphi %s701_s12, %s894_s12  }
   0x3   : > { %p27_p1 = scmp.ge.s32.totalorder %s25_s15, 2  ;;  %p158_p2 = scmp.lt.s32.totalorder %s678_s14, 3 }
   0x5   : > { %s897_s15 = smov (%p27_p1, %s25_s15), 0  ;;  %p159_p3 = pnand %p621_p0, %p158_p2 }
   0x6   : > { %p191_p4 = scmp.lt.s32.totalorder (!%p159_p3), %s670_s12, 1 }
   0x7   : > { %162 = sbr.rel (%p159_p3) target bundleno = 225 (0xe1), region = 32 }
   0xc   : > { %s899_s12 = smov (!%p191_p4, %s670_s12), 1  ;;  %vm526_vm0 = vcmask 1043456  }
   0xd   : > { %s628_s16 = sshll.u32 %s899_s12, 10  ;;  %s629_s24 = sshll.u32 %s899_s12, 3 }
   0xe   : > { %s725_s19 = scalar_lea.vmem %s890_s0, %s628_s16  ;;  %s208_s27 = scalar_lea.vmem %s893_s3, %s629_s24 }
   0xf   : > { %v238_v0 = vld [vmem:[%s725_s19 + $0xe0] sm:$0xff]  ;;  %v240_v1 = vld [vmem:[%s725_s19 + $0xf0] sm:$0xff] }
  0x10   : > { %v270_v2 = vld [vmem:[%s725_s19 + $0x1e0] sm:$0xff]  ;;  %v352_v3 = vpack.c.bf16 %v240_v1, %v238_v0  ;;  %v272_v4 = vld [vmem:[%s725_s19 + $0x1f0] sm:$0xff] }
  0x11   : > { %v302_v5 = vld [vmem:[%s725_s19 + $0x2e0] sm:$0xff]  ;;  %v304_v6 = vld [vmem:[%s725_s19 + $0x2f0] sm:$0xff]  ;;  %v368_v7 = vpack.c.bf16 %v272_v4, %v270_v2 }
  0x12   : > { %v384_v8 = vpack.c.bf16 %v304_v6, %v302_v5  ;;  %v334_v9 = vld [vmem:[%s725_s19 + $0x3e0] sm:$0xff]  ;;  %v336_v10 = vld [vmem:[%s725_s19 + $0x3f0] sm:$0xff]  ;;  %419 = vmatpush.bf16.msra.mxu0 %v352_v3 }
  0x13   : > { %v234_v11 = vld [vmem:[%s725_s19 + $0xc0] sm:$0xff]  ;;  %v400_v12 = vpack.c.bf16 %v336_v10, %v334_v9  ;;  %v236_v13 = vld [vmem:[%s725_s19 + $0xd0] sm:$0xff]  ;;  %432 = vmatpush.bf16.msra.mxu1 %v368_v7 }
  0x14   : > { %v266_v14 = vld [vmem:[%s725_s19 + $0x1c0] sm:$0xff]  ;;  %v268_v15 = vld [vmem:[%s725_s19 + $0x1d0] sm:$0xff]  ;;  %445 = vmatpush.bf16.msra.mxu2 %v384_v8  ;;  %v350_v16 = vpack.c.bf16 %v236_v13, %v234_v11 }
  0x15   : > { %v366_v17 = vpack.c.bf16 %v268_v15, %v266_v14  ;;  %v298_v18 = vld [vmem:[%s725_s19 + $0x2c0] sm:$0xff]  ;;  %v300_v19 = vld [vmem:[%s725_s19 + $0x2d0] sm:$0xff]  ;;  %458 = vmatpush.bf16.msra.mxu3 %v400_v12 }
  0x16   : > { %v330_v20 = vld [vmem:[%s725_s19 + $0x3c0] sm:$0xff]  ;;  %v382_v21 = vpack.c.bf16 %v300_v19, %v298_v18  ;;  %v332_v22 = vld [vmem:[%s725_s19 + $0x3d0] sm:$0xff]  ;;  %420 = vmatpush.bf16.msra.mxu0 %v350_v16 }
  0x17   : > { %v230_v23 = vld [vmem:[%s725_s19 + $0xa0] sm:$0xff]  ;;  %v232_v24 = vld [vmem:[%s725_s19 + $0xb0] sm:$0xff]  ;;  %v398_v25 = vpack.c.bf16 %v332_v22, %v330_v20  ;;  %433 = vmatpush.bf16.msra.mxu1 %v366_v17 }
  0x18   : > { %v262_v26 = vld [vmem:[%s725_s19 + $0x1a0] sm:$0xff]  ;;  %v264_v27 = vld [vmem:[%s725_s19 + $0x1b0] sm:$0xff]  ;;  %v348_v29 = vpack.c.bf16 %v232_v24, %v230_v23  ;;  %446 = vmatpush.bf16.msra.mxu2 %v382_v21 }
  0x19   : > { %v294_v28 = vld [vmem:[%s725_s19 + $0x2a0] sm:$0xff]  ;;  %v296_v30 = vld [vmem:[%s725_s19 + $0x2b0] sm:$0xff]  ;;  %v364_v33 = vpack.c.bf16 %v264_v27, %v262_v26  ;;  %459 = vmatpush.bf16.msra.mxu3 %v398_v25 }
  0x1a   : > { %v326_v31 = vld [vmem:[%s725_s19 + $0x3a0] sm:$0xff]  ;;  %v328_v32 = vld [vmem:[%s725_s19 + $0x3b0] sm:$0xff]  ;;  %v380_v34 = vpack.c.bf16 %v296_v30, %v294_v28  ;;  %421 = vmatpush.bf16.msra.mxu0 %v348_v29  ;;  %v239_v28 = vld [vmem:[%s725_s19 + $0xe8] sm:$0xff] }
  0x1b   : > { %v226_v35 = vld [vmem:[%s725_s19 + $0x80] sm:$0xff]  ;;  %v228_v36 = vld [vmem:[%s725_s19 + $0x90] sm:$0xff]  ;;  %v396_v38 = vpack.c.bf16 %v328_v32, %v326_v31  ;;  %434 = vmatpush.bf16.msra.mxu1 %v364_v33  ;;  %v241_v29 = vld [vmem:[%s725_s19 + $0xf8] sm:$0xff] }
  0x1c   : > { %v258_v37 = vld [vmem:[%s725_s19 + $0x180] sm:$0xff]  ;;  %v260_v39 = vld [vmem:[%s725_s19 + $0x190] sm:$0xff]  ;;  %v346_v44 = vpack.c.bf16 %v228_v36, %v226_v35  ;;  %447 = vmatpush.bf16.msra.mxu2 %v380_v34  ;;  %v271_v30 = vld [vmem:[%s725_s19 + $0x1e8] sm:$0xff] }
  0x1d   : > { %v290_v40 = vld [vmem:[%s725_s19 + $0x280] sm:$0xff]  ;;  %v292_v41 = vld [vmem:[%s725_s19 + $0x290] sm:$0xff]  ;;  %v362_v45 = vpack.c.bf16 %v260_v39, %v258_v37  ;;  %460 = vmatpush.bf16.msra.mxu3 %v396_v38  ;;  %v273_v33 = vld [vmem:[%s725_s19 + $0x1f8] sm:$0xff] }
  0x1e   : > { %v322_v42 = vld [vmem:[%s725_s19 + $0x380] sm:$0xff]  ;;  %v324_v43 = vld [vmem:[%s725_s19 + $0x390] sm:$0xff]  ;;  %v378_v46 = vpack.c.bf16 %v292_v41, %v290_v40  ;;  %422 = vmatpush.bf16.msra.mxu0 %v346_v44  ;;  %v303_v34 = vld [vmem:[%s725_s19 + $0x2e8] sm:$0xff]  ;;  %v353_v41 = vpack.c.bf16 %v241_v29, %v239_v28  ;;  %v369_v44 = vpack.c.bf16 %v273_v33, %v271_v30 }
  0x1f   : > { %v222_v47 = vld [vmem:[%s725_s19 + $0x60] sm:$0xff]  ;;  %v224_v48 = vld [vmem:[%s725_s19 + $0x70] sm:$0xff]  ;;  %v394_v50 = vpack.c.bf16 %v324_v43, %v322_v42  ;;  %435 = vmatpush.bf16.msra.mxu1 %v362_v45  ;;  %v305_v35 = vld [vmem:[%s725_s19 + $0x2f8] sm:$0xff]  ;;  %v680_v43 = vmov 0  }
  0x20   : > { %v254_v49 = vld [vmem:[%s725_s19 + $0x160] sm:$0xff]  ;;  %v256_v51 = vld [vmem:[%s725_s19 + $0x170] sm:$0xff]  ;;  %v344_v56 = vpack.c.bf16 %v224_v48, %v222_v47  ;;  %448 = vmatpush.bf16.msra.mxu2 %v378_v46  ;;  %v335_v38 = vld [vmem:[%s725_s19 + $0x3e8] sm:$0xff]  ;;  %655 = vset.pattern.permute.xlu0 %v680_v43  ;;  %v385_v45 = vpack.c.bf16 %v305_v35, %v303_v34 }
  0x21   : > { %v286_v52 = vld [vmem:[%s725_s19 + $0x260] sm:$0xff]  ;;  %v288_v53 = vld [vmem:[%s725_s19 + $0x270] sm:$0xff]  ;;  %v360_v57 = vpack.c.bf16 %v256_v51, %v254_v49  ;;  %461 = vmatpush.bf16.msra.mxu3 %v394_v50  ;;  %v337_v39 = vld [vmem:[%s725_s19 + $0x3f8] sm:$0xff] }
  0x22   : > { %v318_v54 = vld [vmem:[%s725_s19 + $0x360] sm:$0xff]  ;;  %v320_v55 = vld [vmem:[%s725_s19 + $0x370] sm:$0xff]  ;;  %v376_v58 = vpack.c.bf16 %v288_v53, %v286_v52  ;;  %423 = vmatpush.bf16.msra.mxu0 %v344_v56  ;;  %v235_v42 = vld [vmem:[%s725_s19 + $0xc8] sm:$0xff]  ;;  %v401_v49 = vpack.c.bf16 %v337_v39, %v335_v38 }
  0x23   : > { %v218_v59 = vld [vmem:[%s725_s19 + $0x40] sm:$0xff]  ;;  %v220_v60 = vld [vmem:[%s725_s19 + $0x50] sm:$0xff]  ;;  %v392_v62 = vpack.c.bf16 %v320_v55, %v318_v54  ;;  %436 = vmatpush.bf16.msra.mxu1 %v360_v57  ;;  %v237_v46 = vld [vmem:[%s725_s19 + $0xd8] sm:$0xff] }
  0x24   : > { %v250_v61 = vld [vmem:[%s725_s19 + $0x140] sm:$0xff]  ;;  %v252_v63 = vld [vmem:[%s725_s19 + $0x150] sm:$0xff]  ;;  %v342_v4 = vpack.c.bf16 %v220_v60, %v218_v59  ;;  %449 = vmatpush.bf16.msra.mxu2 %v376_v58  ;;  %v267_v47 = vld [vmem:[%s725_s19 + $0x1c8] sm:$0xff]  ;;  %v351_v56 = vpack.c.bf16 %v237_v46, %v235_v42 }
  0x25   : > { %v282_v0 = vld [vmem:[%s725_s19 + $0x240] sm:$0xff]  ;;  %v284_v1 = vld [vmem:[%s725_s19 + $0x250] sm:$0xff]  ;;  %v358_v5 = vpack.c.bf16 %v252_v63, %v250_v61  ;;  %462 = vmatpush.bf16.msra.mxu3 %v392_v62  ;;  %v269_v48 = vld [vmem:[%s725_s19 + $0x1d8] sm:$0xff] }
  0x26   : > { %v314_v2 = vld [vmem:[%s725_s19 + $0x340] sm:$0xff]  ;;  %v316_v3 = vld [vmem:[%s725_s19 + $0x350] sm:$0xff]  ;;  %v374_v6 = vpack.c.bf16 %v284_v1, %v282_v0  ;;  %424 = vmatpush.bf16.msra.mxu0 %v342_v4  ;;  %v299_v50 = vld [vmem:[%s725_s19 + $0x2c8] sm:$0xff]  ;;  %v367_v61 = vpack.c.bf16 %v269_v48, %v267_v47 }
  0x27   : > { %v214_v7 = vld [vmem:[%s725_s19 + $0x20] sm:$0xff]  ;;  %v216_v8 = vld [vmem:[%s725_s19 + $0x30] sm:$0xff]  ;;  %v390_v10 = vpack.c.bf16 %v316_v3, %v314_v2  ;;  %437 = vmatpush.bf16.msra.mxu1 %v358_v5  ;;  %v301_v51 = vld [vmem:[%s725_s19 + $0x2d8] sm:$0xff] }
  0x28   : > { %v246_v9 = vld [vmem:[%s725_s19 + $0x120] sm:$0xff]  ;;  %v248_v11 = vld [vmem:[%s725_s19 + $0x130] sm:$0xff]  ;;  %v340_v16 = vpack.c.bf16 %v216_v8, %v214_v7  ;;  %450 = vmatpush.bf16.msra.mxu2 %v374_v6  ;;  %v331_v52 = vld [vmem:[%s725_s19 + $0x3c8] sm:$0xff]  ;;  %v383_v62 = vpack.c.bf16 %v301_v51, %v299_v50 }
  0x29   : > { %v278_v12 = vld [vmem:[%s725_s19 + $0x220] sm:$0xff]  ;;  %v280_v13 = vld [vmem:[%s725_s19 + $0x230] sm:$0xff]  ;;  %v356_v20 = vpack.c.bf16 %v248_v11, %v246_v9  ;;  %463 = vmatpush.bf16.msra.mxu3 %v390_v10  ;;  %v333_v53 = vld [vmem:[%s725_s19 + $0x3d8] sm:$0xff] }
  0x2a   : > { %v310_v14 = vld [vmem:[%s725_s19 + $0x320] sm:$0xff]  ;;  %v312_v15 = vld [vmem:[%s725_s19 + $0x330] sm:$0xff]  ;;  %v372_v21 = vpack.c.bf16 %v280_v13, %v278_v12  ;;  %425 = vmatpush.bf16.msra.mxu0 %v340_v16  ;;  %v231_v54 = vld [vmem:[%s725_s19 + $0xa8] sm:$0xff]  ;;  %v399_v1 = vpack.c.bf16 %v333_v53, %v331_v52 }
  0x2b   : > { %v210_v17 = vld [vmem:[%s725_s19] sm:$0xff]  ;;  %v212_v18 = vld [vmem:[%s725_s19 + $0x10] sm:$0xff]  ;;  %v388_v25 = vpack.c.bf16 %v312_v15, %v310_v14  ;;  %438 = vmatpush.bf16.msra.mxu1 %v356_v20  ;;  %v233_v55 = vld [vmem:[%s725_s19 + $0xb8] sm:$0xff] }
  0x2c   : > { %v242_v19 = vld [vmem:[%s725_s19 + $0x100] sm:$0xff]  ;;  %v244_v22 = vld [vmem:[%s725_s19 + $0x110] sm:$0xff]  ;;  %v338_v32 = vpack.c.bf16 %v212_v18, %v210_v17  ;;  %451 = vmatpush.bf16.msra.mxu2 %v372_v21  ;;  %v263_v57 = vld [vmem:[%s725_s19 + $0x1a8] sm:$0xff]  ;;  %v349_v6 = vpack.c.bf16 %v233_v55, %v231_v54 }
  0x2d   : > { %v274_v23 = vld [vmem:[%s725_s19 + $0x200] sm:$0xff]  ;;  %v276_v24 = vld [vmem:[%s725_s19 + $0x210] sm:$0xff]  ;;  %v354_v36 = vpack.c.bf16 %v244_v22, %v242_v19  ;;  %464 = vmatpush.bf16.msra.mxu3 %v388_v25  ;;  %v265_v58 = vld [vmem:[%s725_s19 + $0x1b8] sm:$0xff] }
  0x2e   : > { %v306_v26 = vld [vmem:[%s725_s19 + $0x300] sm:$0xff]  ;;  %v308_v27 = vld [vmem:[%s725_s19 + $0x310] sm:$0xff]  ;;  %v370_v37 = vpack.c.bf16 %v276_v24, %v274_v23  ;;  %426 = vmatpush.bf16.msra.mxu0 %v338_v32  ;;  %v295_v59 = vld [vmem:[%s725_s19 + $0x2a8] sm:$0xff]  ;;  %v365_v7 = vpack.c.bf16 %v265_v58, %v263_v57 }
  0x2f   : > { %v402_v31 = vld [vmem:[%s891_s1] sm:$0xff]  ;;  %v386_v40 = vpack.c.bf16 %v308_v27, %v306_v26  ;;  %439 = vmatpush.bf16.msra.mxu1 %v354_v36  ;;  %v297_v60 = vld [vmem:[%s725_s19 + $0x2b8] sm:$0xff]  ;;  %v327_v4 = vld [vmem:[%s725_s19 + $0x3a8] sm:$0xff] }
  0x30   : > { %410 = vst [vmem:[#allocation1] ss:$4 sm:$0xff] %v402_v31  ;;  %452 = vmatpush.bf16.msra.mxu2 %v370_v37  ;;  %v329_v5 = vld [vmem:[%s725_s19 + $0x3b8] sm:$0xff]  ;;  %v381_v8 = vpack.c.bf16 %v297_v60, %v295_v59  ;;  %v227_v9 = vld [vmem:[%s725_s19 + $0x88] sm:$0xff]  ;;  %v403_v24 = vld [vmem:[%s892_s2] sm:$0xf] }
  0x31   : > { %465 = vmatpush.bf16.msra.mxu3 %v386_v40  ;;  %v229_v10 = vld [vmem:[%s725_s19 + $0x98] sm:$0xff]  ;;  %v259_v11 = vld [vmem:[%s725_s19 + $0x188] sm:$0xff]  ;;  %v397_v12 = vpack.c.bf16 %v329_v5, %v327_v4  ;;  %406 = vperm.xlu0 %655, %v403_v24  }
  0x32   : > { %471 = vmatpush.bf16.msrb.mxu0 %v353_v41  ;;  %v261_v13 = vld [vmem:[%s725_s19 + $0x198] sm:$0xff]  ;;  %v291_v14 = vld [vmem:[%s725_s19 + $0x288] sm:$0xff]  ;;  %v347_v18 = vpack.c.bf16 %v229_v10, %v227_v9 }
  0x33   : > { %484 = vmatpush.bf16.msrb.mxu1 %v369_v44  ;;  %v293_v15 = vld [vmem:[%s725_s19 + $0x298] sm:$0xff]  ;;  %v323_v16 = vld [vmem:[%s725_s19 + $0x388] sm:$0xff]  ;;  %v363_v20 = vpack.c.bf16 %v261_v13, %v259_v11 }
  0x34   : > { %497 = vmatpush.bf16.msrb.mxu2 %v385_v45  ;;  %v325_v17 = vld [vmem:[%s725_s19 + $0x398] sm:$0xff]  ;;  %v223_v19 = vld [vmem:[%s725_s19 + $0x68] sm:$0xff]  ;;  %v379_v21 = vpack.c.bf16 %v293_v15, %v291_v14 }
  0x35   : > { %510 = vmatpush.bf16.msrb.mxu3 %v401_v49  ;;  %v225_v22 = vld [vmem:[%s725_s19 + $0x78] sm:$0xff]  ;;  %v255_v23 = vld [vmem:[%s725_s19 + $0x168] sm:$0xff]  ;;  %v395_v25 = vpack.c.bf16 %v325_v17, %v323_v16 }
  0x36   : > { %472 = vmatpush.bf16.msrb.mxu0 %v351_v56  ;;  %v257_v26 = vld [vmem:[%s725_s19 + $0x178] sm:$0xff]  ;;  %v287_v27 = vld [vmem:[%s725_s19 + $0x268] sm:$0xff]  ;;  %v345_v31 = vpack.c.bf16 %v225_v22, %v223_v19 }
  0x37   : > { %v816_v63 = vld.sshfl [vmem:[#allocation1 + $0x10] sm:$0xff pattern:$0x73625140]  ;;  %v818_v0 = vld.sshfl [vmem:[#allocation1 + $0x18] sm:$0xff pattern:$0x73625140]  ;;  %485 = vmatpush.bf16.msrb.mxu1 %v367_v61  ;;  %v361_v32 = vpack.c.bf16 %v257_v26, %v255_v23 }
  0x38   : > { %453 = vmatmul.bf16.vlgmr.msra.gmra.mxu2 %v816_v63  ;;  %v821_v2 = vld.sshfl [vmem:[#allocation1] sm:$0xff pattern:$0x73625140]  ;;  %v823_v3 = vld.sshfl [vmem:[#allocation1 + $0x8] sm:$0xff pattern:$0x73625140]  ;;  %466 = vmatmul.bf16.vlgmr.msra.gmra.mxu3 %v818_v0 }
  0x39   : > { %427 = vmatmul.bf16.vlgmr.msra.gmra.mxu0 %v821_v2  ;;  %440 = vmatmul.bf16.vlgmr.msra.gmra.mxu1 %v823_v3  ;;  %v289_v28 = vld [vmem:[%s725_s19 + $0x278] sm:$0xff]  ;;  %v319_v29 = vld [vmem:[%s725_s19 + $0x368] sm:$0xff] }
  0x3a   : > { %498 = vmatpush.bf16.msrb.mxu2 %v383_v62  ;;  %511 = vmatpush.bf16.msrb.mxu3 %v399_v1  ;;  %v321_v30 = vld [vmem:[%s725_s19 + $0x378] sm:$0xff]  ;;  %v377_v33 = vpack.c.bf16 %v289_v28, %v287_v27  ;;  %v219_v34 = vld [vmem:[%s725_s19 + $0x48] sm:$0xff] }
  0x3b   : > { %473 = vmatpush.bf16.msrb.mxu0 %v349_v6  ;;  %486 = vmatpush.bf16.msrb.mxu1 %v365_v7  ;;  %v221_v35 = vld [vmem:[%s725_s19 + $0x58] sm:$0xff]  ;;  %v251_v36 = vld [vmem:[%s725_s19 + $0x148] sm:$0xff]  ;;  %v393_v37 = vpack.c.bf16 %v321_v30, %v319_v29 }
  0x3c   : > { %v253_v38 = vld [vmem:[%s725_s19 + $0x158] sm:$0xff]  ;;  %v283_v39 = vld [vmem:[%s725_s19 + $0x248] sm:$0xff]  ;;  %v343_v43 = vpack.c.bf16 %v221_v35, %v219_v34 }
  0x3d   : > { %v285_v40 = vld [vmem:[%s725_s19 + $0x258] sm:$0xff]  ;;  %v315_v41 = vld [vmem:[%s725_s19 + $0x348] sm:$0xff]  ;;  %v359_v44 = vpack.c.bf16 %v253_v38, %v251_v36 }
  0x3e   : > { %499 = vmatpush.bf16.msrb.mxu2 %v381_v8  ;;  %512 = vmatpush.bf16.msrb.mxu3 %v397_v12  ;;  %v317_v42 = vld [vmem:[%s725_s19 + $0x358] sm:$0xff]  ;;  %v375_v45 = vpack.c.bf16 %v285_v40, %v283_v39  ;;  %v215_v46 = vld [vmem:[%s725_s19 + $0x28] sm:$0xff] }
  0x3f   : > { %474 = vmatpush.bf16.msrb.mxu0 %v347_v18  ;;  %487 = vmatpush.bf16.msrb.mxu1 %v363_v20  ;;  %v217_v47 = vld [vmem:[%s725_s19 + $0x38] sm:$0xff]  ;;  %v247_v48 = vld [vmem:[%s725_s19 + $0x128] sm:$0xff]  ;;  %v391_v49 = vpack.c.bf16 %v317_v42, %v315_v41 }
  0x40   : > { %v249_v50 = vld [vmem:[%s725_s19 + $0x138] sm:$0xff]  ;;  %v279_v51 = vld [vmem:[%s725_s19 + $0x228] sm:$0xff]  ;;  %v341_v55 = vpack.c.bf16 %v217_v47, %v215_v46 }
  0x41   : > { %v281_v52 = vld [vmem:[%s725_s19 + $0x238] sm:$0xff]  ;;  %v311_v53 = vld [vmem:[%s725_s19 + $0x328] sm:$0xff]  ;;  %v357_v56 = vpack.c.bf16 %v249_v50, %v247_v48 }
  0x42   : > { %500 = vmatpush.bf16.msrb.mxu2 %v379_v21  ;;  %513 = vmatpush.bf16.msrb.mxu3 %v395_v25  ;;  %v313_v54 = vld [vmem:[%s725_s19 + $0x338] sm:$0xff]  ;;  %v373_v57 = vpack.c.bf16 %v281_v52, %v279_v51  ;;  %v211_v58 = vld [vmem:[%s725_s19 + $0x8] sm:$0xff] }
  0x43   : > { %475 = vmatpush.bf16.msrb.mxu0 %v345_v31  ;;  %488 = vmatpush.bf16.msrb.mxu1 %v361_v32  ;;  %v213_v59 = vld [vmem:[%s725_s19 + $0x18] sm:$0xff]  ;;  %v243_v60 = vld [vmem:[%s725_s19 + $0x108] sm:$0xff]  ;;  %v389_v61 = vpack.c.bf16 %v313_v54, %v311_v53 }
  0x44   : > { %v245_v62 = vld [vmem:[%s725_s19 + $0x118] sm:$0xff]  ;;  %v275_v1 = vld [vmem:[%s725_s19 + $0x208] sm:$0xff]  ;;  %v339_v7 = vpack.c.bf16 %v213_v59, %v211_v58 }
  0x45   : > { %v277_v4 = vld [vmem:[%s725_s19 + $0x218] sm:$0xff]  ;;  %v307_v5 = vld [vmem:[%s725_s19 + $0x308] sm:$0xff]  ;;  %v355_v8 = vpack.c.bf16 %v245_v62, %v243_v60 }
  0x46   : > { %501 = vmatpush.bf16.msrb.mxu2 %v377_v33  ;;  %514 = vmatpush.bf16.msrb.mxu3 %v393_v37  ;;  %v309_v6 = vld [vmem:[%s725_s19 + $0x318] sm:$0xff]  ;;  %v371_v9 = vpack.c.bf16 %v277_v4, %v275_v1 }
  0x47   : > { %476 = vmatpush.bf16.msrb.mxu0 %v343_v43  ;;  %489 = vmatpush.bf16.msrb.mxu1 %v359_v44  ;;  %v387_v10 = vpack.c.bf16 %v309_v6, %v307_v5 }
  0x4a   : > { %502 = vmatpush.bf16.msrb.mxu2 %v375_v45  ;;  %515 = vmatpush.bf16.msrb.mxu3 %v391_v49 }
  0x4b   : > { %477 = vmatpush.bf16.msrb.mxu0 %v341_v55  ;;  %490 = vmatpush.bf16.msrb.mxu1 %v357_v56 }
  0x4e   : > { %503 = vmatpush.bf16.msrb.mxu2 %v373_v57  ;;  %516 = vmatpush.bf16.msrb.mxu3 %v389_v61 }
  0x4f   : > { %478 = vmatpush.bf16.msrb.mxu0 %v339_v7  ;;  %491 = vmatpush.bf16.msrb.mxu1 %v355_v8 }
  0x52   : > { %504 = vmatpush.bf16.msrb.mxu2 %v371_v9  ;;  %517 = vmatpush.bf16.msrb.mxu3 %v387_v10 }
  0x53   : > { %479 = vmatmul.bf16.vlgmr.msrb.gmra.mxu0 %v821_v2  ;;  %492 = vmatmul.bf16.vlgmr.msrb.gmra.mxu1 %v823_v3 }
  0x55   : > { %505 = vmatmul.bf16.vlgmr.msrb.gmra.mxu2 %v816_v63  ;;  %518 = vmatmul.bf16.vlgmr.msrb.gmra.mxu3 %v818_v0 }
  0xa3   : > { %v407_v19 = vpop.permute.xlu0 %406 }
  0xb6   : > { %v428_v11 = vpop.f32.mrf.mxu0  ;;  %v441_v12 = vpop.f32.mrf.mxu1 }
  0xb7   : > { %v429_v20 = vadd.f32 %v428_v11, %v407_v19 }
  0xb9   : > { %v442_v23 = vadd.f32 %v441_v12, %v429_v20 }
  0xbb   : > { %v454_v13 = vpop.f32.mrf.mxu2  ;;  %v467_v14 = vpop.f32.mrf.mxu3 }
  0xbc   : > { %v455_v63 = vadd.f32 %v454_v13, %v442_v23 }
  0xbe   : > { %v430_v15 = vpop.f32.mrf.mxu0  ;;  %v443_v16 = vpop.f32.mrf.mxu1  ;;  %v468_v29 = vadd.f32 %v467_v14, %v455_v63 }
  0xc3   : > { %v456_v17 = vpop.f32.mrf.mxu2  ;;  %v469_v18 = vpop.f32.mrf.mxu3 }
  0xd0   : > { %v480_v21 = vpop.f32.mrf.mxu0  ;;  %v493_v2 = vpop.f32.mrf.mxu1 }
  0xd1   : > { %v481_v22 = vadd.f32 %v480_v21, %v407_v19 }
  0xd3   : > { %v494_v3 = vadd.f32 %v493_v2, %v481_v22 }
  0xd8   : > { %v506_v24 = vpop.f32.mrf.mxu2  ;;  %v519_v0 = vpop.f32.mrf.mxu3 }
  0xd9   : > { %v507_v25 = vadd.f32 %v506_v24, %v494_v3  ;;  %v482_v26 = vpop.f32.mrf.mxu0  ;;  %v495_v27 = vpop.f32.mrf.mxu1 }
  0xdb   : > { %v520_v28 = vadd.f32 %v519_v0, %v507_v25 }
  0xdd   : > { %v525_v30 = vrot.slane %v520_v28, 4 }
  0xdf   : > { %v527_v31 = vsel %vm526_vm0, %v468_v29, %v525_v30 }
  0xe0   : > { %529 = vst [vmem:[%s208_s27] sm:$0xff] %v527_v31  ;;  %v508_v32 = vpop.f32.mrf.mxu2  ;;  %v521_v33 = vpop.f32.mrf.mxu3 }
  0xe1 PF: > { %s13_s14 = sadd.s32 1, %s678_s14   ;;  %s894_s12 = smov %s674_s13 }
  0xe2   : > { %p10_p5 = scmp.ge.s32.totalorder %s13_s14, 4   ;;  %s895_s13 = smov %s897_s15 }
  0xe4   :  { %12 = sbr.rel (!%p10_p5) target bundleno = 2 (0x2), region = 62 }

</bundles_post_ra>
